<compile_context>
chip_gen: v5e
topology: v5e:2x2
jax: 0.10.0
libtpu: 0.0.40
codegen_flags: <defaults>
</compile_context>

<pallas_src>
import functools

import numpy as np
import jax
import jax.numpy as jnp
from jax.experimental import pallas as pl
from jax.experimental.pallas import tpu as pltpu


def _round_up(x, m):
    return ((x + m - 1) // m) * m


def _vmem_capacity_bytes(default=64 << 20):
    """Physical VMEM of the attached TPU (fallback: 64 MiB, the v7x minimum)."""
    try:
        info = pltpu.get_tpu_info()
        cap = getattr(info, "vmem_capacity_bytes", None)
        if cap:
            return int(cap)
    except Exception:
        pass
    return default


def _largest_divisor_leq(n, cap):
    cap = max(1, min(int(cap), int(n)))
    for d in range(cap, 0, -1):
        if n % d == 0:
            return d
    return 1


def _choose_batch_tile(batch, per_row_bytes, budget_bytes):
    """Pick the batch tile by VMEM bytes (no fixed row cap)."""
    target = max(1, int(budget_bytes) // max(1, int(per_row_bytes)))
    # Keep >= 2 grid blocks whenever the batch allows it so v7x's two
    # TensorCores both get work under dimension_semantics=("parallel",).
    cap = min(target, max(1, batch // 2)) if batch >= 2 else 1
    tb = _largest_divisor_leq(batch, cap)
    need_pad = False
    if tb * 8 < min(cap, batch):
        # Pathological divisor structure (e.g. a large prime batch): accept one
        # batch-padding HBM copy instead of hundreds of tiny grid steps.
        tb = min(cap, batch)
        need_pad = True
    return tb, need_pad


def _fsm_fused_kernel(emb_ref, w_ref, b_ref, out_ref, *,
                      filter_sizes, num_channel, seq_len, batch_tile, out_pad):
    """One batch tile: fused conv (single wide matmul) + bias + ReLU + max."""
    C = num_channel
    L = seq_len
    TB = batch_tile
    M = TB * L

    emb2 = emb_ref[0]                                    # (TB*L, D), no relayout
    # Single wide MXU matmul: (TB*L, D) @ (D, n_pad), f32 accumulation.
    p = jnp.dot(emb2, w_ref[...], preferred_element_type=jnp.float32)
    b_all = b_ref[...]                                   # (1, out_pad) f32
    t_idx = jax.lax.broadcasted_iota(jnp.int32, (TB, L, 1), 1)

    pieces = []
    tap = 0
    for j, fs in enumerate(filter_sizes):                # static, small
        l_out = L - fs + 1
        acc = p[:, tap * C:(tap + 1) * C]
        for i in range(1, fs):
            # Shift rows up by i with an XLU sublane rotate (no misaligned
            # sublane slices).  Rows that wrap across sequence / batch-element
            # boundaries all land at t >= l_out and are masked out below.
            acc = acc + pltpu.roll(p[:, (tap + i) * C:(tap + i + 1) * C],
                                   shift=M - i, axis=0)
        acc = jnp.maximum(acc + b_all[:, j * C:(j + 1) * C], 0.0)  # bias + ReLU
        acc3 = acc.reshape(TB, L, C)                     # small; free if L%8==0
        # Post-ReLU values are >= 0, so masking invalid windows to 0 never
        # changes the per-row max.
        acc3 = jnp.where(t_idx < l_out, acc3, 0.0)
        pieces.append(jnp.max(acc3, axis=1))             # max-pool -> (TB, C)
        tap += fs

    nf_c = len(filter_sizes) * C
    if out_pad > nf_c:
        pieces.append(jnp.zeros((TB, out_pad - nf_c), jnp.float32))
    # One full-width (lane-dense) store per tile.
    out_ref[0] = jnp.concatenate(pieces, axis=1)


def fsm_pooled(emb, convs, filter_sizes, *, compute_dtype=jnp.bfloat16,
               vmem_budget_bytes=40 << 20, emb_buffers=2):
    """emb: (B, L, D); convs: list of (w:(fs,D,C), b:(1,C)) -> (B, nf*C) f32."""
    B, L, D = emb.shape
    C = int(convs[0][0].shape[2])
    nf = len(filter_sizes)
    T = int(sum(filter_sizes))
    d_pad = _round_up(D, 128)            # lane padding of emb rows in VMEM
    n_pad = _round_up(T * C, 128)        # matmul N padded to lane-dense 128
    out_pad = _round_up(nf * C, 128)     # lane-dense pooled output
    in_itemsize = jnp.dtype(compute_dtype).itemsize

    # Fuse all per-tap weights of every filter size into one (D, n_pad) matrix.
    w_cat = jnp.concatenate(
        [w[i] for (w, _), fs in zip(convs, filter_sizes) for i in range(fs)],
        axis=1)                                                  # (D, T*C)
    w_in = jnp.pad(w_cat, ((0, 0), (0, n_pad - T * C))).astype(compute_dtype)
    b_cat = jnp.concatenate([b.reshape(1, -1) for (_, b) in convs], axis=1)
    b_in = jnp.pad(b_cat, ((0, 0), (0, out_pad - nf * C))).astype(jnp.float32)

    # --- Batch tile sized by VMEM bytes, lane-padding aware (v7x-safe). -----
    vmem_cap = _vmem_capacity_bytes()
    budget = min(int(vmem_budget_bytes), (vmem_cap * 3) // 4)
    per_row = (2 * L * d_pad * in_itemsize      # double-buffered emb tile rows
               + 2 * L * n_pad * 4              # f32 matmul result + live copy
               + 2 * out_pad * 4)               # double-buffered output rows
    tb, need_pad = _choose_batch_tile(B, per_row, budget)

    emb_in = emb
    if need_pad:                                # rare fallback (prime batches)
        b_pad = _round_up(B, tb)
        emb_in = jnp.concatenate(
            [emb_in, jnp.zeros((b_pad - B, L, D), emb_in.dtype)], axis=0)
    else:
        b_pad = B
    nb = b_pad // tb

    # Cast only if needed: supply emb already in compute_dtype (e.g. keep the
    # embedding table in bf16) to avoid an extra HBM read+write pass here.
    if emb_in.dtype != compute_dtype:
        emb_in = emb_in.astype(compute_dtype)
    # Free, contiguous HBM reshape; the kernel never relayouts the big tile.
    emb_in = emb_in.reshape(nb, tb * L, D)

    kern = functools.partial(
        _fsm_fused_kernel,
        filter_sizes=tuple(int(f) for f in filter_sizes),
        num_channel=C, seq_len=int(L), batch_tile=int(tb), out_pad=int(out_pad))

    # Lane-padding-aware VMEM estimate; limit up to 3/4 of *physical* VMEM
    # (96 MiB on v5e/v6e, 48 MiB on v7x) instead of a hard 32 MiB clamp.
    vmem_est = (2 * D * n_pad * in_itemsize + 2 * out_pad * 4 + tb * per_row)
    vmem_limit = int(min((vmem_cap * 3) // 4,
                         max(32 << 20, vmem_est + (8 << 20))))

    emb_spec_kwargs = {}
    if emb_buffers and int(emb_buffers) > 2:
        # Optional deeper pipelining of the emb stream if a trace shows
        # exposed DMA between grid steps (skip on v7x if VMEM gets tight).
        emb_spec_kwargs["pipeline_mode"] = pl.Buffered(int(emb_buffers))

    out = pl.pallas_call(
        kern,
        out_shape=jax.ShapeDtypeStruct((nb, tb, out_pad), jnp.float32),
        grid_spec=pltpu.PrefetchScalarGridSpec(
            num_scalar_prefetch=0,
            grid=(nb,),
            in_specs=[
                pl.BlockSpec((1, tb * L, D), lambda bi: (bi, 0, 0),
                             **emb_spec_kwargs),
                pl.BlockSpec((D, n_pad), lambda bi: (0, 0)),     # grid-invariant
                pl.BlockSpec((1, out_pad), lambda bi: (0, 0)),   # grid-invariant
            ],
            out_specs=pl.BlockSpec((1, tb, out_pad), lambda bi: (bi, 0, 0)),
        ),
        compiler_params=pltpu.CompilerParams(
            dimension_semantics=("parallel",),   # shard batch blocks across TCs
            vmem_limit_bytes=vmem_limit),
    )(emb_in, w_in, b_in)

    return out.reshape(b_pad, out_pad)[:B, :nf * C]


def init_fsm_params(key, num_embeddings, num_channel, embed_dim,
                    filter_sizes, pad_idx=0, table_dtype=jnp.float32):
    # Store the embedding table in bf16 (table_dtype=jnp.bfloat16) to feed the
    # kernel without any wrapper-side cast pass over (B, L, D).
    keys = jax.random.split(key, 1 + 2 * len(filter_sizes))
    emb_table = (jax.random.normal(keys[0], (num_embeddings, embed_dim),
                                   jnp.float32) * 0.1)
    emb_table = emb_table.at[pad_idx].set(0.0)          # padding_idx row = 0
    emb_table = emb_table.astype(table_dtype)
    convs = []
    for i, fs in enumerate(filter_sizes):
        fan_in = fs * embed_dim
        bound = 1.0 / np.sqrt(fan_in)
        w = jax.random.uniform(keys[1 + 2 * i], (fs, embed_dim, num_channel),
                               jnp.float32, -bound, bound)
        b = jax.random.uniform(keys[2 + 2 * i], (1, num_channel),
                               jnp.float32, -bound, bound)
        convs.append((w, b))
    return {"embedding": emb_table, "convs": convs,
            "filter_sizes": tuple(filter_sizes)}


def fsm_forward(x, params, *, compute_dtype=jnp.bfloat16):
    """x: (B, L) int32 token ids.

    Returns (pooled_features, embeddings) matching the PyTorch module:
      pooled_features: (1, B, num_channel * len(filter_sizes)) f32
      embeddings:      (B, L, D) in the embedding-table dtype
    """
    emb = jnp.take(params["embedding"], x, axis=0)      # embedding lookup (glue)
    # Stretch goal (not implemented): fuse this gather into the kernel via
    # scalar-prefetched token ids so the hot path reads ids + table only.
    pooled = fsm_pooled(emb, params["convs"], params["filter_sizes"],
                        compute_dtype=compute_dtype)    # fused Pallas hot path
    return pooled[None], emb


def _ref_pooled(emb, w, b, fs):
    """Pure-JAX reference for one filter size (correctness check)."""
    L = emb.shape[1]
    l_out = L - fs + 1
    windows = jnp.stack([emb[:, i:i + l_out, :] for i in range(fs)], axis=2)
    scores = jnp.einsum("btfd,fdc->btc", windows.astype(jnp.float32), w) + b[0]
    return jnp.max(jax.nn.relu(scores), axis=1)


if __name__ == "__main__":
    num_embeddings = 20
    num_channel = 8
    embed_dim = 32
    filter_sizes = (2, 3, 4)
    B, L = 2, 16

    root = jax.random.PRNGKey(0)
    k_param, k_x = jax.random.split(root)
    params = init_fsm_params(k_param, num_embeddings, num_channel,
                             embed_dim, filter_sizes, pad_idx=0)
    x = jax.random.randint(k_x, (B, L), 0, num_embeddings, dtype=jnp.int32)

    # Default hot path: bf16 MXU inputs, f32 accumulation + f32 epilogue.
    pooled_features, emb_out = fsm_forward(x, params)
    pooled_features = jax.block_until_ready(pooled_features)
    emb_out = jax.block_until_ready(emb_out)

    assert pooled_features.shape == (1, B, num_channel * len(filter_sizes))
    assert emb_out.shape == (B, L, embed_dim)

    # Pure-JAX reference (f32).
    ref_parts = [_ref_pooled(emb_out, w, b, fs)
                 for fs, (w, b) in zip(filter_sizes, params["convs"])]
    ref = jnp.concatenate(ref_parts, axis=1)

    # Default bf16-input path: loose check against the f32 reference.
    np.testing.assert_allclose(np.asarray(pooled_features[0]), np.asarray(ref),
                               rtol=5e-2, atol=5e-2)

    # f32-input path: strict check.
    pooled_f32 = fsm_pooled(emb_out, params["convs"], params["filter_sizes"],
                            compute_dtype=jnp.float32)
    pooled_f32 = jax.block_until_ready(pooled_f32)
    np.testing.assert_allclose(np.asarray(pooled_f32), np.asarray(ref),
                               rtol=1e-5, atol=1e-5)

    print("KERNEL_OK")
</pallas_src>

<mosaic_0001>
module attributes {stable_mosaic.version = 11 : i64} {
  func.func @_fsm_fused_kernel(%arg0: i32, %arg1: memref<1x16x32xbf16, #tpu.memory_space<vmem>>, %arg2: memref<32x128xbf16, #tpu.memory_space<vmem>>, %arg3: memref<1x128xf32, #tpu.memory_space<vmem>>, %arg4: memref<1x1x128xf32, #tpu.memory_space<vmem>>) attributes {dimension_semantics = [#tpu.dimension_semantics<parallel>], iteration_bounds = array<i64: 2>, scalar_prefetch = 0 : i64, scratch_operands = 0 : i64, tpu.core_type = #tpu.core_type<tc>, window_params = [{transform_indices = @transform_0, window_bounds = array<i64: 1, 16, 32>}, {pipeline_mode = #tpu.pipeline_mode<synchronous>, transform_indices = @transform_1, window_bounds = array<i64: 32, 128>}, {pipeline_mode = #tpu.pipeline_mode<synchronous>, transform_indices = @transform_2, window_bounds = array<i64: 1, 128>}, {transform_indices = @transform_3, window_bounds = array<i64: 1, 1, 128>}]} {
    %c0 = arith.constant 0 : index
    %c0_0 = arith.constant 0 : index
    %c0_1 = arith.constant 0 : index
    %0 = vector.load %arg1[%c0, %c0_0, %c0_1] : memref<1x16x32xbf16, #tpu.memory_space<vmem>>, vector<1x16x32xbf16>
    %1 = vector.shape_cast %0 : vector<1x16x32xbf16> to vector<16x32xbf16>
    %c0_2 = arith.constant 0 : index
    %c0_3 = arith.constant 0 : index
    %2 = vector.load %arg2[%c0_2, %c0_3] : memref<32x128xbf16, #tpu.memory_space<vmem>>, vector<32x128xbf16>
    %cst = arith.constant dense<0.000000e+00> : vector<16x128xf32>
    %3 = tpu.matmul %1, %2, %cst {dimension_numbers = #tpu.dot_dimension_numbers<[1], [0], [0], [1], [0, 0, 1, 1], [], []>} : vector<16x32xbf16>, vector<32x128xbf16>, vector<16x128xf32> -> vector<16x128xf32>
    %c0_4 = arith.constant 0 : index
    %c0_5 = arith.constant 0 : index
    %4 = vector.load %arg3[%c0_4, %c0_5] : memref<1x128xf32, #tpu.memory_space<vmem>>, vector<1x128xf32>
    %5 = tpu.iota {dimensions = array<i32: 1>} : vector<1x16x1xi32>
    %6 = vector.extract_strided_slice %3 {offsets = [0, 0], sizes = [16, 8], strides = [1, 1]} : vector<16x128xf32> to vector<16x8xf32>
    %7 = vector.extract_strided_slice %3 {offsets = [0, 8], sizes = [16, 8], strides = [1, 1]} : vector<16x128xf32> to vector<16x8xf32>
    %c15_i32 = arith.constant 15 : i32
    %8 = tpu.dynamic_rotate %7 by %c15_i32 dim 0 : vector<16x8xf32>, i32 -> vector<16x8xf32>
    %9 = arith.addf %6, %8 : vector<16x8xf32>
    %10 = vector.extract_strided_slice %4 {offsets = [0, 0], sizes = [1, 8], strides = [1, 1]} : vector<1x128xf32> to vector<1x8xf32>
    %11 = vector.broadcast %10 : vector<1x8xf32> to vector<16x8xf32>
    %12 = arith.addf %9, %11 : vector<16x8xf32>
    %cst_6 = arith.constant 0.000000e+00 : f32
    %13 = vector.broadcast %cst_6 : f32 to vector<16x8xf32>
    %14 = arith.maximumf %12, %13 : vector<16x8xf32>
    %15 = vector.shape_cast %14 : vector<16x8xf32> to vector<1x16x8xf32>
    %c15_i32_7 = arith.constant 15 : i32
    %16 = vector.broadcast %c15_i32_7 : i32 to vector<1x16x1xi32>
    %17 = arith.cmpi slt, %5, %16 : vector<1x16x1xi32>
    %cst_8 = arith.constant 0.000000e+00 : f32
    %18 = vector.shape_cast %17 : vector<1x16x1xi1> to vector<1x16x1xi1>
    %19 = vector.broadcast %18 : vector<1x16x1xi1> to vector<1x16x8xi1>
    %20 = vector.broadcast %cst_8 : f32 to vector<1x16x8xf32>
    %21 = arith.select %19, %15, %20 : vector<1x16x8xi1>, vector<1x16x8xf32>
    %cst_9 = arith.constant dense<0xFF800000> : vector<1x8xf32>
    %22 = vector.multi_reduction <maximumf>, %21, %cst_9 [1] : vector<1x16x8xf32> to vector<1x8xf32>
    %23 = vector.extract_strided_slice %3 {offsets = [0, 16], sizes = [16, 8], strides = [1, 1]} : vector<16x128xf32> to vector<16x8xf32>
    %24 = vector.extract_strided_slice %3 {offsets = [0, 24], sizes = [16, 8], strides = [1, 1]} : vector<16x128xf32> to vector<16x8xf32>
    %c15_i32_10 = arith.constant 15 : i32
    %25 = tpu.dynamic_rotate %24 by %c15_i32_10 dim 0 : vector<16x8xf32>, i32 -> vector<16x8xf32>
    %26 = arith.addf %23, %25 : vector<16x8xf32>
    %27 = vector.extract_strided_slice %3 {offsets = [0, 32], sizes = [16, 8], strides = [1, 1]} : vector<16x128xf32> to vector<16x8xf32>
    %c14_i32 = arith.constant 14 : i32
    %28 = tpu.dynamic_rotate %27 by %c14_i32 dim 0 : vector<16x8xf32>, i32 -> vector<16x8xf32>
    %29 = arith.addf %26, %28 : vector<16x8xf32>
    %30 = vector.extract_strided_slice %4 {offsets = [0, 8], sizes = [1, 8], strides = [1, 1]} : vector<1x128xf32> to vector<1x8xf32>
    %31 = vector.broadcast %30 : vector<1x8xf32> to vector<16x8xf32>
    %32 = arith.addf %29, %31 : vector<16x8xf32>
    %cst_11 = arith.constant 0.000000e+00 : f32
    %33 = vector.broadcast %cst_11 : f32 to vector<16x8xf32>
    %34 = arith.maximumf %32, %33 : vector<16x8xf32>
    %35 = vector.shape_cast %34 : vector<16x8xf32> to vector<1x16x8xf32>
    %c14_i32_12 = arith.constant 14 : i32
    %36 = vector.broadcast %c14_i32_12 : i32 to vector<1x16x1xi32>
    %37 = arith.cmpi slt, %5, %36 : vector<1x16x1xi32>
    %cst_13 = arith.constant 0.000000e+00 : f32
    %38 = vector.shape_cast %37 : vector<1x16x1xi1> to vector<1x16x1xi1>
    %39 = vector.broadcast %38 : vector<1x16x1xi1> to vector<1x16x8xi1>
    %40 = vector.broadcast %cst_13 : f32 to vector<1x16x8xf32>
    %41 = arith.select %39, %35, %40 : vector<1x16x8xi1>, vector<1x16x8xf32>
    %cst_14 = arith.constant dense<0xFF800000> : vector<1x8xf32>
    %42 = vector.multi_reduction <maximumf>, %41, %cst_14 [1] : vector<1x16x8xf32> to vector<1x8xf32>
    %43 = vector.extract_strided_slice %3 {offsets = [0, 40], sizes = [16, 8], strides = [1, 1]} : vector<16x128xf32> to vector<16x8xf32>
    %44 = vector.extract_strided_slice %3 {offsets = [0, 48], sizes = [16, 8], strides = [1, 1]} : vector<16x128xf32> to vector<16x8xf32>
    %c15_i32_15 = arith.constant 15 : i32
    %45 = tpu.dynamic_rotate %44 by %c15_i32_15 dim 0 : vector<16x8xf32>, i32 -> vector<16x8xf32>
    %46 = arith.addf %43, %45 : vector<16x8xf32>
    %47 = vector.extract_strided_slice %3 {offsets = [0, 56], sizes = [16, 8], strides = [1, 1]} : vector<16x128xf32> to vector<16x8xf32>
    %c14_i32_16 = arith.constant 14 : i32
    %48 = tpu.dynamic_rotate %47 by %c14_i32_16 dim 0 : vector<16x8xf32>, i32 -> vector<16x8xf32>
    %49 = arith.addf %46, %48 : vector<16x8xf32>
    %50 = vector.extract_strided_slice %3 {offsets = [0, 64], sizes = [16, 8], strides = [1, 1]} : vector<16x128xf32> to vector<16x8xf32>
    %c13_i32 = arith.constant 13 : i32
    %51 = tpu.dynamic_rotate %50 by %c13_i32 dim 0 : vector<16x8xf32>, i32 -> vector<16x8xf32>
    %52 = arith.addf %49, %51 : vector<16x8xf32>
    %53 = vector.extract_strided_slice %4 {offsets = [0, 16], sizes = [1, 8], strides = [1, 1]} : vector<1x128xf32> to vector<1x8xf32>
    %54 = vector.broadcast %53 : vector<1x8xf32> to vector<16x8xf32>
    %55 = arith.addf %52, %54 : vector<16x8xf32>
    %cst_17 = arith.constant 0.000000e+00 : f32
    %56 = vector.broadcast %cst_17 : f32 to vector<16x8xf32>
    %57 = arith.maximumf %55, %56 : vector<16x8xf32>
    %58 = vector.shape_cast %57 : vector<16x8xf32> to vector<1x16x8xf32>
    %c13_i32_18 = arith.constant 13 : i32
    %59 = vector.broadcast %c13_i32_18 : i32 to vector<1x16x1xi32>
    %60 = arith.cmpi slt, %5, %59 : vector<1x16x1xi32>
    %cst_19 = arith.constant 0.000000e+00 : f32
    %61 = vector.shape_cast %60 : vector<1x16x1xi1> to vector<1x16x1xi1>
    %62 = vector.broadcast %61 : vector<1x16x1xi1> to vector<1x16x8xi1>
    %63 = vector.broadcast %cst_19 : f32 to vector<1x16x8xf32>
    %64 = arith.select %62, %58, %63 : vector<1x16x8xi1>, vector<1x16x8xf32>
    %cst_20 = arith.constant dense<0xFF800000> : vector<1x8xf32>
    %65 = vector.multi_reduction <maximumf>, %64, %cst_20 [1] : vector<1x16x8xf32> to vector<1x8xf32>
    %cst_21 = arith.constant 0.000000e+00 : f32
    %66 = vector.broadcast %cst_21 : f32 to vector<1x104xf32>
    %67 = tpu.concatenate %22, %42, %65, %66 in 1 : vector<1x8xf32>, vector<1x8xf32>, vector<1x8xf32>, vector<1x104xf32> -> vector<1x128xf32>
    %c0_22 = arith.constant 0 : index
    %c0_23 = arith.constant 0 : index
    %c0_24 = arith.constant 0 : index
    %68 = vector.load %arg4[%c0_22, %c0_23, %c0_24] : memref<1x1x128xf32, #tpu.memory_space<vmem>>, vector<1x1x128xf32>
    %69 = vector.shape_cast %68 : vector<1x1x128xf32> to vector<1x128xf32>
    %70 = vector.shape_cast %67 : vector<1x128xf32> to vector<1x1x128xf32>
    tpu.vector_store %arg4[%c0_22, %c0_23, %c0_24], %70 {strides = array<i32>} : memref<1x1x128xf32, #tpu.memory_space<vmem>>, vector<1x1x128xf32>,
    return
  }
  func.func @transform_0(%arg0: i32) -> (i32, i32, i32) {
    %c0_i32 = arith.constant 0 : i32
    %c0_i32_0 = arith.constant 0 : i32
    %c0_i32_1 = arith.constant 0 : i32
    return %arg0, %c0_i32, %c0_i32_0 : i32, i32, i32
  }
  func.func @transform_1(%arg0: i32) -> (i32, i32) {
    %c0_i32 = arith.constant 0 : i32
    %c0_i32_0 = arith.constant 0 : i32
    %c0_i32_1 = arith.constant 0 : i32
    return %c0_i32, %c0_i32_0 : i32, i32
  }
  func.func @transform_2(%arg0: i32) -> (i32, i32) {
    %c0_i32 = arith.constant 0 : i32
    %c0_i32_0 = arith.constant 0 : i32
    %c0_i32_1 = arith.constant 0 : i32
    return %c0_i32, %c0_i32_0 : i32, i32
  }
  func.func @transform_3(%arg0: i32) -> (i32, i32, i32) {
    %c0_i32 = arith.constant 0 : i32
    %c0_i32_0 = arith.constant 0 : i32
    %c0_i32_1 = arith.constant 0 : i32
    return %arg0, %c0_i32, %c0_i32_0 : i32, i32, i32
  }
}

</mosaic_0001>

<bundles_post_ra>
// kernel: tpu_custom_call.1
= control target key start
LH: loop header
LB: loop body
LE: loop exit
PB: predicated region body
PF: predicated region fallthrough
CT: control target
= control target key end

     0   :  { %8 = vsyncpa [#allocation3], 0  ;;  %s1023_s0 = inlined_call_operand.hbm [shape: bf16[2,16,32], index: 0, kind: input, shape index: {}]   ;;  %s1024_s1 = inlined_call_operand.hbm [shape: bf16[32,128], index: 1, kind: input, shape index: {}]   ;;  %s1025_s2 = inlined_call_operand.vmem [shape: f32[1,128], index: 2, kind: input, shape index: {}]   ;;  %s1026_s3 = inlined_call_operand.hbm [shape: f32[2,1,128], index: 3, kind: output, shape index: {}]  }
   0x1   :  { %10 = vsyncpa [#allocation3 + $0x1], 0 }
   0x2   :  { %11 = vsyncpa [#allocation6], 0 }
   0x3   :  { %12 = vsyncpa [#allocation4], 0 }
   0x4   :  { %14 = vsyncpa [#allocation4 + $0x1], 0  ;;  %s812_s12 = smov 0   ;;  %s814_s13 = smov 0  }
   0x5   :  { %s816_s14 = smov 0   ;;  %s818_s15 = smov 0  }
   0x6 LB: > { %s833_s16 = sadd.s32 4294967295, %s777_s15   ;;  %s548_s17 = sadd.s32 4294967294, %s777_s15   ;;  %s777_s15 = sphi %s818_s15, %s1036_s15   ;;  %s773_s14 = sphi %s816_s14, %s1035_s14   ;;  %s769_s13 = sphi %s814_s13, %s1034_s13   ;;  %s765_s12 = sphi %s812_s12, %s1033_s12  }
   0x7   : > { %p40_p0 = scmp.ne.s32.totalorder %s769_s13, %s765_s12  ;;  %p41_p1 = scmp.eq.s32.totalorder %s833_s16, 0 }
   0x8   : > { %p106_p2 = scmp.eq.s32.totalorder %s833_s16, 1  ;;  %p112_p3 = scmp.eq.s32.totalorder %s548_s17, 1 }
   0x9   : > { %p842_p4 = por %p41_p1, %p40_p0  ;;  %p549_p5 = scmp.ge.s32.totalorder %s777_s15, 1 }
   0xa   : > { %p847_p6 = por %p112_p3, %p40_p0  ;;  %p119_p7 = scmp.lt.s32.totalorder %s777_s15, 3 }
   0xb   : > { %s130_s22 = sshll.u32 %s1024_s1, 4  ;;  %s779_s24 = smov [#allocation5]   ;;  %s131_s22 = int_to_ptr.hbm [resolvable:$true] %s130_s22 }
   0xc   : > { %p855_p8 = pnand %p549_p5, %p119_p7  ;;  %s132_s25 = sshll.u32 %s779_s24, 4  ;;  %s133_s25 = int_to_ptr.vmem [resolvable:$true] %s132_s25 }
   0xd   : > { %s865_s26 = sadd.s32 1, %s777_s15   ;;  %s780_s27 = smov 64  }
   0xe   : > { %p585_p9 = pneg %p855_p8  ;;  %s781_s28 = smov 4  }
   0xf   : > { %s24_s29 = ssub.s32 %s777_s15, %s865_s26  ;;  %s27_s30 = sadd.s32 1, %s773_s14 }
  0x10   : > { %p586_p10 = pnand %p585_p9, %p41_p1  ;;  %p25_p12 = scmp.eq.s32.totalorder %s24_s29, 0 }
  0x11   : > { %p34_p13 = scmp.ne.s32.totalorder %s773_s14, %s769_s13  ;;  %p35_p0 = scmp.eq.s32.totalorder %s777_s15, 0 }
  0x12   : > { %588 = dma.hbm_to_vmem [thread:$0]  (!%p586_p10), %s131_s22, 256, %s133_s25, [#allocation6], %s780_s27, %s780_s27, %s781_s28  }
  0x13   : > { %s877_s4 = scalar_select %p25_p12, %s773_s14, %s27_s30  }
  0x14   : > { %p881_p3 = por %p106_p2, %p34_p13  ;;  %p598_p5 = scmp.lt.s32.totalorder %s777_s15, 2 }
  0x15   : > { %s149_s6 = sand.u32 1, %s773_s14   ;;  %s573_s7 = sshll.u32 %s777_s15, 3 }
  0x16   : > { %p36_p7 = por %p35_p0, %p34_p13  ;;  %s552_s8 = sshll.u32 %s149_s6, 3 }
  0x17   : > { %s158_s11 = scalar_lea.hbm %s1023_s0, %s573_s7  ;;  %s153_s20 = scalar_lea.vmem [#allocation2], %s552_s8 }
  0x18   : > { %s159_s17 = sshll.u32 %s158_s11, 4  ;;  %s161_s21 = sshll.u32 %s153_s20, 4  ;;  %s160_s17 = int_to_ptr.hbm [resolvable:$true] %s159_s17  ;;  %s162_s21 = int_to_ptr.vmem [resolvable:$true] %s161_s21 }
  0x19   : > { %p891_p9 = pnand %p598_p5, %p36_p7  ;;  %s150_s24 = scalar_lea.sflag [#allocation3], %s149_s6 }
  0x1a   : > { %s677_s25 = sshra.s32 %s160_s17, 4  ;;  %s684_s8 = scalar_lea.hbm %s1023_s0, 16  ;;  %s678_s25 = int_to_ptr.hbm [resolvable:$true] %s677_s25 }
  0x1b   : > { %s679_s29 = scalar_lea.hbm %s678_s25, 8  ;;  %p681_p10 = pneg %p891_p9 }
  0x1c   : > { %p680_p2 = scmp.ne.s32.totalorder %s678_s25, %s679_s29  ;;  %p685_p0 = scmp.lt.s32.totalorder %s678_s25, %s1023_s0 }
  0x1d   : > { %p686_p5 = scmp.lt.s32.totalorder %s684_s8, %s679_s29 }
  0x1e   : > { %p682_p12 = pnand %p681_p10, %p680_p2 }
  0x1f   : > { %p687_p7 = por %p686_p5, %p685_p0 }
  0x20   : > { %p683_p13 = pneg %p682_p12 }
  0x22   : > { %p688_p11 = pnand %p687_p7, %p683_p13 }
  0x24   : > { %691 = shalt.err (!%p688_p11)
}
  0x25   : > { %592 = dma.hbm_to_vmem [thread:$0]  (!%p891_p9), %s160_s17, 128, %s162_s21, %s150_s24, %s780_s27, %s780_s27, %s781_s28  }
  0x26   : > { %173 = sbr.rel (%p855_p8) target bundleno = 595 (0x253), region = 32  ;;  %s911_s6 = sand.u32 (!%p855_p8), 1, %s769_s13  }
  0x27   : > { %s556_s11 = sshll.u32 (!%p855_p8), %s911_s6, 3  ;;  %s176_s20 = scalar_lea.sflag (!%p855_p8), [#allocation3], %s911_s6 }
  0x28   : > { %s179_s25 = scalar_lea.vmem (!%p855_p8), [#allocation2], %s556_s11 }
  0x2b   : > { %752 = dma.done.wait (%p842_p4), %s176_s20, 128  }
  0x2c   : > { %754 = vsyncadd (%p842_p4), %s176_s20, 4294967168 }
  0x2d   : > { %756 = dma.done.wait (%p41_p1), [#allocation6], 256  }
  0x2e   : > { %758 = vsyncadd (%p41_p1), [#allocation6], 4294967040  ;;  %v576_v0 = vld [vmem:[#allocation5 + $0x8] sm:$0xff]  ;;  %v575_v1 = vld [vmem:[#allocation5] sm:$0xff]  ;;  %vm231_vm0 = vcmask 261120   ;;  %s782_s23 = smov 72   ;;  %v250_v8 = vlaneseq  ;;  %s468_s11 = scalar_lea.hbm %s1026_s3, %s833_s16 }
  0x2f   : > { %241 = vmatpush.bf16.msra.mxu0 %v576_v0  ;;  %v574_v2 = vld [vmem:[%s179_s25] sm:$0xff]  ;;  %s783_s18 = smov 104   ;;  %s784_s27 = smov 80   ;;  %vm349_vm5 = vcmask 195712   ;;  %vm435_vm7 = vcmask 392512   ;;  %vm283_vm9 = vcmask 64512  }
  0x30   : > { %s785_s28 = smov 96   ;;  %s786_s17 = smov 64   ;;  %v939_v9 = vshrl.u32 %v250_v8, 7  ;;  %v963_v37 = vld [vmem:[%s1025_s2] ss:$0 sm:$0xff]  ;;  %vm454_vm10 = vcmask 130048  }
  0x31   : > { %s787_s21 = smov 16   ;;  %s788_s22 = smov 40   ;;  %vm456_vm11 = vcmask 195584  }
  0x32   : > { %vm263_vm1 = vcmp.lt.s32.totalorder %v939_v9, 7  ;;  %vm321_vm2 = vcmp.lt.s32.totalorder %v939_v9, 6  ;;  %vm407_vm3 = vcmp.lt.s32.totalorder %v939_v9, 5  ;;  %s789_s30 = smov 120   ;;  %s790_s7 = smov 8   ;;  %v252_v54 = vadd.s32 8, %v939_v9 }
  0x33   : > { %242 = vmatpush.bf16.msra.mxu0 %v575_v1  ;;  %s791_s8 = smov 24   ;;  %s206_s20 = scalar_lea.vmem [#allocation7], %s911_s6 }
  0x34   : > { %vm342_vm4 = vcmp.lt.s32.totalorder %v252_v54, 14  ;;  %vm428_vm6 = vcmp.lt.s32.totalorder %v252_v54, 13  ;;  %vm276_vm8 = vcmp.lt.s32.totalorder %v252_v54, 15  ;;  %s470_s25 = sshll.u32 %s206_s20, 4  ;;  %s471_s25 = int_to_ptr.vmem [resolvable:$true] %s470_s25 }
  0x36   : > { %570 = vmatmul.msk.bf16.vlgmr.msra.gmra.mxu0 %vm231_vm0, %v574_v2 }
  0xb3   : > { %v923_v3 = vpop.f32.mrf.mxu0 }
  0xb4   : > { %379 = vrot.lane.b32.xlu2 %v923_v3, %s782_s23  ;;  %293 = vrot.lane.b32.xlu1 %v923_v3, %s783_s18 }
  0xb5   : > { %359 = vrot.lane.b32.xlu0 %v923_v3, %s784_s27 }
  0xbb   : > { %v929_v4 = vpop.f32.mrf.mxu0 }
  0xbc   : > { %381 = vrot.lane.b32.xlu2 %v929_v4, %s782_s23  ;;  %295 = vrot.lane.b32.xlu1 %v929_v4, %s783_s18  ;;  %s472_s23 = sshll.u32 %s468_s11, 4  ;;  %s473_s23 = int_to_ptr.hbm [resolvable:$true] %s472_s23 }
  0xbd   : > { %313 = vrot.lane.b32.xlu0 %v923_v3, %s785_s28 }
  0xc4   : > { %399 = vrot.lane.b32.xlu2 %v923_v3, %s786_s17  ;;  %315 = vrot.lane.b32.xlu1 %v929_v4, %s785_s28 }
  0xc5   : > { %361 = vrot.lane.b32.xlu0 %v929_v4, %s784_s27  ;;  %s721_s27 = sshra.s32 %s473_s23, 4  ;;  %s722_s27 = int_to_ptr.hbm [resolvable:$true] %s721_s27 }
  0xc6   : > { %s723_s16 = scalar_lea.hbm %s722_s27, 1  ;;  %p728_p11 = scmp.lt.s32.totalorder %s722_s27, %s1026_s3 }
  0xc7   : > { %p724_p1 = scmp.ne.s32.totalorder %s722_s27, %s723_s16 }
  0xc9   : > { %p725_p4 = pnand %p724_p1, %p881_p3 }
  0xcb   : > { %p726_p8 = pneg %p725_p4 }
  0xcd   : > { %401 = vrot.lane.b32.xlu0 %v929_v4, %s786_s17 }
 0x10e   : > { %v380_v7 = vpop.permute.xlu2 %379 }
 0x10f   : > { %v385_v17 = vrot.slane %v380_v7, 2 }
 0x116   : > { %v382_v15 = vpop.permute.xlu2 %381 }
 0x117   : > { %v386_v16 = vrot.slane %v382_v15, 2 }
 0x119   : > { %v388_v21 = vsel %vm321_vm2, %v386_v16, %v385_v17  ;;  %v387_v35 = vsel %vm321_vm2, %v385_v17, %v386_v16 }
 0x11e   : > { %v400_v31 = vpop.permute.xlu2 %399 }
 0x11f   : > { %v405_v33 = vrot.slane %v400_v31, 3 }
 0x126   : > { %v294_v5 = vpop.permute.xlu1 %293 }
 0x127   : > { %v360_v6 = vpop.permute.xlu0 %359  ;;  %v299_v11 = vrot.slane %v294_v5, 1 }
 0x128   : > { %v365_v19 = vrot.slane %v360_v6, 1 }
 0x12e   : > { %v296_v10 = vpop.permute.xlu1 %295 }
 0x12f   : > { %v314_v12 = vpop.permute.xlu0 %313  ;;  %v300_v13 = vrot.slane %v296_v10, 1 }
 0x130   : > { %v319_v26 = vrot.slane %v314_v12, 2 }
 0x131   : > { %v302_v14 = vsel %vm263_vm1, %v300_v13, %v299_v11  ;;  %v301_v29 = vsel %vm263_vm1, %v299_v11, %v300_v13 }
 0x132   : > { %307 = vrot.lane.b32.xlu2 %v302_v14, %s787_s21 }
 0x136   : > { %v316_v22 = vpop.permute.xlu1 %315 }
 0x137   : > { %v362_v18 = vpop.permute.xlu0 %361  ;;  %v320_v25 = vrot.slane %v316_v22, 2 }
 0x138   : > { %v366_v20 = vrot.slane %v362_v18, 1 }
 0x139   : > { %v322_v27 = vsel %vm321_vm2, %v319_v26, %v320_v25  ;;  %v323_v30 = vsel %vm321_vm2, %v320_v25, %v319_v26 }
 0x13a   : > { %393 = vrot.lane.b32.xlu2 %v388_v21, %s788_s22  ;;  %v368_v23 = vsel %vm263_vm1, %v366_v20, %v365_v19  ;;  %v367_v24 = vsel %vm263_vm1, %v365_v19, %v366_v20 }
 0x13b   : > { %373 = vrot.lane.b32.xlu1 %v368_v23, %s788_s22  ;;  %371 = vrot.lane.b32.xlu0 %v367_v24, %s788_s22 }
 0x13f   : > { %v402_v28 = vpop.permute.xlu0 %401 }
 0x140   : > { %v406_v32 = vrot.slane %v402_v28, 3 }
 0x142   : > { %326 = vrot.lane.b32.xlu2 %v322_v27, %s787_s21  ;;  %v408_v34 = vsel %vm407_vm3, %v405_v33, %v406_v32  ;;  %v409_v36 = vsel %vm407_vm3, %v406_v32, %v405_v33 }
 0x143   : > { %305 = vrot.lane.b32.xlu1 %v301_v29, %s787_s21  ;;  %328 = vrot.lane.b32.xlu0 %v323_v30, %s787_s21  ;;  %s727_s21 = scalar_lea.hbm %s1026_s3, 2 }
 0x144   : > { %p729_p9 = scmp.lt.s32.totalorder %s727_s21, %s723_s16 }
 0x146   : > { %p730_p2 = por %p729_p9, %p728_p11 }
 0x148   : > { %p731_p10 = pnand %p730_p2, %p726_p8 }
 0x14a   : > { %412 = vrot.lane.b32.xlu2 %v408_v34, %s788_s22 }
 0x14b   : > { %391 = vrot.lane.b32.xlu1 %v387_v35, %s788_s22  ;;  %414 = vrot.lane.b32.xlu0 %v409_v36, %s788_s22 }
 0x152   : > { %257 = vrot.lane.b32.xlu2 %v929_v4, %s789_s30 }
 0x153   : > { %334 = vrot.lane.b32.xlu1 %v963_v37, %s790_s7  ;;  %420 = vrot.lane.b32.xlu0 %v963_v37, %s791_s8 }
 0x15b   : > { %255 = vrot.lane.b32.xlu1 %v923_v3, %s789_s30 }
 0x18c   : > { %v308_v38 = vpop.permute.xlu2 %307 }
 0x18d   : > { %v312_v51 = vadd.f32 %v308_v38, %v929_v4 }
 0x194   : > { %v394_v41 = vpop.permute.xlu2 %393 }
 0x19c   : > { %v327_v44 = vpop.permute.xlu2 %326 }
 0x1a4   : > { %v413_v53 = vpop.permute.xlu2 %412 }
 0x1ac   : > { %v258_v29 = vpop.permute.xlu2 %257 }
 0x1ad   : > { %v374_v39 = vpop.permute.xlu1 %373  ;;  %v372_v40 = vpop.permute.xlu0 %371  ;;  %v262_v31 = vrot.slane %v258_v29, 1 }
 0x1ae   : > { %v378_v47 = vadd.f32 %v374_v39, %v929_v4  ;;  %v377_v48 = vadd.f32 %v372_v40, %v923_v3 }
 0x1b0   : > { %v398_v52 = vadd.f32 %v394_v41, %v378_v47 }
 0x1b5   : > { %v306_v42 = vpop.permute.xlu1 %305  ;;  %v329_v43 = vpop.permute.xlu0 %328 }
 0x1b6   : > { %v311_v49 = vadd.f32 %v306_v42, %v923_v3  ;;  %v333_v56 = vadd.f32 %v329_v43, %v312_v51 }
 0x1b8   : > { %v332_v55 = vadd.f32 %v327_v44, %v311_v49 }
 0x1bd   : > { %v392_v45 = vpop.permute.xlu1 %391  ;;  %v415_v46 = vpop.permute.xlu0 %414 }
 0x1be   : > { %v397_v50 = vadd.f32 %v392_v45, %v377_v48  ;;  %v419_v58 = vadd.f32 %v415_v46, %v398_v52 }
 0x1c0   : > { %v418_v57 = vadd.f32 %v413_v53, %v397_v50 }
 0x1c5   : > { %v335_v59 = vpop.permute.xlu1 %334  ;;  %v421_v60 = vpop.permute.xlu0 %420 }
 0x1c6   : > { %v337_v61 = vadd.f32 %v335_v59, %v332_v55  ;;  %v338_v62 = vadd.f32 %v335_v59, %v333_v56  ;;  %v423_v63 = vadd.f32 %v421_v60, %v418_v57  ;;  %v424_v0 = vadd.f32 %v421_v60, %v419_v58 }
 0x1c8   : > { %v339_v1 = vmax.f32 %v337_v61, 0.0  ;;  %v340_v2 = vmax.f32 %v338_v62, 0.0  ;;  %v425_v5 = vmax.f32 %v423_v63, 0.0  ;;  %v426_v6 = vmax.f32 %v424_v0, 0.0 }
 0x1ca   : > { %v348_v7 = vsel %vm342_vm4, %v340_v2, 0.0  ;;  %v350_v8 = vsel %vm349_vm5, %v339_v1, -inf  ;;  %v434_v10 = vsel %vm428_vm6, %v426_v6, 0.0  ;;  %v436_v11 = vsel %vm435_vm7, %v425_v5, -inf }
 0x1cb   : > { %v351_v12 = vsel %vm349_vm5, %v348_v7, -inf  ;;  %v437_v13 = vsel %vm435_vm7, %v434_v10, -inf }
 0x1cc   : > { %v352_v14 = vmax.f32 %v350_v8, %v351_v12  ;;  %v438_v15 = vmax.f32 %v436_v11, %v437_v13 }
 0x1cd   : > { %v256_v28 = vpop.permute.xlu1 %255 }
 0x1ce   : > { %v353_v16 = vrot.slane %v352_v14, 4  ;;  %v439_v17 = vrot.slane %v438_v15, 4  ;;  %v261_v30 = vrot.slane %v256_v28, 1 }
 0x1d0   : > { %v354_v18 = vmax.f32 %v352_v14, %v353_v16  ;;  %v440_v19 = vmax.f32 %v438_v15, %v439_v17  ;;  %v265_v32 = vsel %vm263_vm1, %v262_v31, %v261_v30  ;;  %v264_v33 = vsel %vm263_vm1, %v261_v30, %v262_v31 }
 0x1d1   : > { %v267_v34 = vadd.f32 %v265_v32, %v929_v4  ;;  %v266_v35 = vadd.f32 %v264_v33, %v923_v3 }
 0x1d2   : > { %v355_v20 = vrot.slane %v354_v18, 2  ;;  %v441_v21 = vrot.slane %v440_v19, 2 }
 0x1d3   : > { %v272_v36 = vadd.f32 %v963_v37, %v267_v34  ;;  %v271_v38 = vadd.f32 %v963_v37, %v266_v35 }
 0x1d4   : > { %v356_v22 = vmax.f32 %v354_v18, %v355_v20  ;;  %v442_v23 = vmax.f32 %v440_v19, %v441_v21 }
 0x1d5   : > { %v274_v39 = vmax.f32 %v272_v36, 0.0  ;;  %v273_v40 = vmax.f32 %v271_v38, 0.0 }
 0x1d6   : > { %v357_v24 = vrot.slane %v356_v22, 1  ;;  %v443_v25 = vrot.slane %v442_v23, 1 }
 0x1d7   : > { %v282_v41 = vsel %vm276_vm8, %v274_v39, 0.0  ;;  %v284_v42 = vsel %vm283_vm9, %v273_v40, -inf }
 0x1d8   : > { %v358_v26 = vmax.f32 %v356_v22, %v357_v24  ;;  %v444_v27 = vmax.f32 %v442_v23, %v443_v25  ;;  %v285_v9 = vsel %vm283_vm9, %v282_v41, -inf }
 0x1d9   : > { %v286_v43 = vmax.f32 %v284_v42, %v285_v9 }
 0x1da   : > { %446 = vrot.lane.b32.xlu0 %v358_v26, %s789_s30  ;;  %450 = vrot.lane.b32.xlu1 %v444_v27, %s783_s18  ;;  %s460_s18 = scalar_lea.sflag [#allocation4], %s911_s6 }
 0x1db   : > { %v287_v44 = vrot.slane %v286_v43, 4 }
 0x1dd   : > { %v288_v4 = vmax.f32 %v286_v43, %v287_v44 }
 0x1df   : > { %v289_v45 = vrot.slane %v288_v4, 2 }
 0x1e1   : > { %v290_v3 = vmax.f32 %v288_v4, %v289_v45 }
 0x1e3   : > { %v291_v46 = vrot.slane %v290_v3, 1 }
 0x1e5   : > { %v292_v37 = vmax.f32 %v290_v3, %v291_v46 }
 0x24c   : > { %v451_v47 = vpop.permute.xlu1 %450  ;;  %v447_v48 = vpop.permute.xlu0 %446 }
 0x24d   : > { %v453_v49 = vsel %vm283_vm9, %v292_v37, %v447_v48 }
 0x24e   : > { %v455_v50 = vsel %vm454_vm10, %v453_v49, %v451_v47 }
 0x24f   : > { %v457_v51 = vsel %vm456_vm11, %v455_v50, 0.0 }
 0x250   : > { %458 = vst [vmem:[%s206_s20] sm:$0x1] %v457_v51 }
 0x251   : > { %734 = shalt.err (!%p731_p10)
}
 0x252   : > { %583 = dma.vmem_to_hbm [thread:$0]  (%p881_p3), %s471_s25, 16, %s473_s23, %s460_s18  }
 0x253 PF: > { %s484_s6 = sand.u32 1, %s765_s12   ;;  %p1032_p12 = scmp.ge.s32.totalorder %s777_s15, 2 }
 0x254   : > { %s485_s29 = scalar_lea.sflag [#allocation4], %s484_s6 }
 0x255   : > { %p594_p13 = pnand %p1032_p12, %p847_p6 }
 0x257   : > { %p595_p0 = pneg %p594_p13 }
 0x259   : > { %760 = dma.done.wait (%p595_p0), %s485_s29, 16  }
 0x25a   : > { %762 = vsyncadd (%p595_p0), %s485_s29, 4294967280  ;;  %p17_p5 = scmp.ge.s32.totalorder %s865_s26, 4   ;;  %s1033_s12 = smov %s769_s13 }
 0x25b   : > { %s1034_s13 = smov %s773_s14  ;;  %s1035_s14 = smov %s877_s4 }
 0x25c   : > { %s1036_s15 = smov %s865_s26  ;;  %19 = sbr.rel (!%p17_p5) target bundleno = 6 (0x6), region = 81 }
 0x261   :  { %490 = vsyncpa [#allocation3], 1 }
 0x262   :  { %492 = vsyncpa [#allocation3 + $0x1], 1 }
 0x263   :  { %493 = vsyncpa [#allocation6], 1 }
 0x264   :  { %494 = vsyncpa [#allocation4], 1 }
 0x265   :  { %496 = vsyncpa [#allocation4 + $0x1], 1 }

</bundles_post_ra>
